<compile_context>
chip_gen: v6e
topology: v6e:2x2x1
jax: 0.10.0
libtpu: 0.0.40
codegen_flags: <defaults>
</compile_context>

<pallas_src>
from typing import NamedTuple, Optional

import jax
import jax.numpy as jnp
from jax.experimental import pallas as pl
from jax.experimental.pallas import tpu as pltpu


# --------------------------------------------------------------------------- #
# Kernel
# --------------------------------------------------------------------------- #
def bc_mlp_kernel(x_ref, w1_ref, b1_ref, w2_ref, b2_ref, o_ref):
    """One batch tile of: logits = relu(x @ W1 + b1) @ W2 + b2."""
    cd = w1_ref.dtype
    # Per-tile cast of x to the MXU compute dtype (no wrapper-side HBM copy).
    x = x_ref[...].astype(cd)
    h = jnp.dot(x, w1_ref[...], preferred_element_type=jnp.float32)
    h = jnp.maximum(h + b1_ref[...], 0.0)               # bias + ReLU in f32 (VPU)
    out = jnp.dot(h.astype(cd), w2_ref[...], preferred_element_type=jnp.float32)
    o_ref[...] = (out + b2_ref[...]).astype(o_ref.dtype)


# --------------------------------------------------------------------------- #
# Sizing helpers
# --------------------------------------------------------------------------- #
def _round_up(v, m):
    return -(-v // m) * m


def _vmem_capacity_bytes():
    try:
        return int(pltpu.get_tpu_info().vmem_capacity_bytes)
    except Exception:
        return 64 << 20  # conservative: assume v7x-sized VMEM


def _vmem_fixed_bytes(in_size, h_pad, a_pad, w_bytes, weight_buffers):
    """Resident weight/bias footprint (layout-padded)."""
    sub = max(8, 32 // w_bytes)                       # 8 sublanes f32, 16 bf16
    w1 = _round_up(in_size, sub) * h_pad * w_bytes
    w2 = _round_up(h_pad, sub) * a_pad * w_bytes
    biases = 8 * (h_pad + a_pad) * 4                  # (1, N) pads to 8 sublanes
    return weight_buffers * (w1 + w2 + biases)


def _vmem_per_row_bytes(in_size, h_pad, a_pad, x_bytes, w_bytes, out_bytes):
    """Per-batch-row VMEM cost (layout-accurate, incl. in-kernel temporaries)."""
    in_lanes = _round_up(in_size, 128)                # x tile is lane-padded in VMEM
    cast_x = in_lanes * w_bytes if w_bytes != x_bytes else 0
    return (2 * in_lanes * x_bytes                    # double-buffered x tile
            + 2 * a_pad * out_bytes                   # double-buffered output tile
            + h_pad * 4                               # f32 hidden activation
            + h_pad * w_bytes                         # compute-dtype copy of hidden
            + a_pad * 4                               # f32 logits temporary
            + cast_x)                                 # compute-dtype copy of x tile


def _choose_tile_b(B, in_size, h_pad, a_pad, x_bytes, w_bytes, out_bytes,
                   vmem_budget, weight_buffers, min_steps=4):
    fixed = _vmem_fixed_bytes(in_size, h_pad, a_pad, w_bytes, weight_buffers)
    per_row = max(1, _vmem_per_row_bytes(in_size, h_pad, a_pad,
                                         x_bytes, w_bytes, out_bytes))
    rows_cap = max(8, int((vmem_budget - fixed) // per_row))
    if B <= min(128, rows_cap):
        return B                                      # tiny batch: single grid step
    # Largest tile that (a) fits the VMEM budget, (b) leaves >= min_steps grid
    # steps (>= 2 pipelined steps per TensorCore on v7x), (c) stays 8-aligned.
    tile = min(rows_cap, 4096, max(8, _round_up(pl.cdiv(B, min_steps), 8)))
    tile = max(8, (tile // 8) * 8)
    return B if tile >= B else tile


# --------------------------------------------------------------------------- #
# Parameters (padded once, reused across forward calls)
# --------------------------------------------------------------------------- #
class BCParams(NamedTuple):
    w1p: jax.Array        # (input_size, h_pad)  compute dtype
    b1p: jax.Array        # (1, h_pad)           f32
    w2p: jax.Array        # (h_pad, a_pad)       compute dtype
    b2p: jax.Array        # (1, a_pad)           f32
    input_size: int
    hidden: int
    num_actions: int


def prepare_params(w1, b1, w2, b2, compute_dtype=jnp.bfloat16) -> BCParams:
    """Pad/cast weights ONCE (cache the result; do not rebuild per forward call).

    w1: (in, hidden), b1: (hidden,), w2: (hidden, actions), b2: (actions,).
    Padded rows/cols are zero so the real logits are untouched and padded logit
    columns come out exactly zero (sliced off in the forward wrapper).
    """
    in_size, hidden = w1.shape
    num_actions = w2.shape[1]
    h_pad = _round_up(hidden, 128)
    a_pad = _round_up(num_actions, 128)
    w1p = jnp.zeros((in_size, h_pad), compute_dtype).at[:, :hidden].set(
        w1.astype(compute_dtype))
    b1p = jnp.zeros((1, h_pad), jnp.float32).at[:, :hidden].set(
        b1.astype(jnp.float32))
    w2p = jnp.zeros((h_pad, a_pad), compute_dtype).at[:hidden, :num_actions].set(
        w2.astype(compute_dtype))
    b2p = jnp.zeros((1, a_pad), jnp.float32).at[:, :num_actions].set(
        b2.astype(jnp.float32))
    return BCParams(w1p, b1p, w2p, b2p, in_size, hidden, num_actions)


# --------------------------------------------------------------------------- #
# Forward
# --------------------------------------------------------------------------- #
def behavior_cloning_forward(x, params: BCParams, *,
                             tile_b: Optional[int] = None,
                             out_dtype=None):
    """x: (B, input_size) in any dtype (cast per-tile inside the kernel).

    Returns logits of shape (B, num_actions), dtype `out_dtype` (default x.dtype).
    """
    B, in_size = x.shape
    assert in_size == params.input_size, "x feature dim does not match params"
    h_pad = params.w1p.shape[1]
    a_pad = params.w2p.shape[1]
    num_actions = params.num_actions
    out_dtype = x.dtype if out_dtype is None else out_dtype

    x_bytes = jnp.dtype(x.dtype).itemsize
    w_bytes = jnp.dtype(params.w1p.dtype).itemsize
    out_bytes = jnp.dtype(out_dtype).itemsize

    cap = _vmem_capacity_bytes()
    vmem_budget = (cap * 5) // 8          # ~40 MiB on 64 MiB parts, ~80 MiB on 128 MiB
    hard_limit = (cap * 3) // 4           # ~48 MiB / ~96 MiB

    user_tile = tile_b

    def pick_tile(weight_buffers):
        if user_tile is not None:
            t = min(user_tile, B)
            return t if t == B else max(8, (t // 8) * 8)
        return _choose_tile_b(B, in_size, h_pad, a_pad, x_bytes, w_bytes,
                              out_bytes, vmem_budget, weight_buffers)

    def vmem_limit_for(tile, weight_buffers):
        usage = (_vmem_fixed_bytes(in_size, h_pad, a_pad, w_bytes, weight_buffers)
                 + tile * _vmem_per_row_bytes(in_size, h_pad, a_pad,
                                              x_bytes, w_bytes, out_bytes))
        return int(min(hard_limit, max(usage + usage // 2, 32 << 20)))

    cost = pl.CostEstimate(
        flops=2 * B * (in_size * params.hidden + params.hidden * num_actions),
        transcendentals=0,
        bytes_accessed=int(x.size * x_bytes
                           + (params.w1p.size + params.w2p.size) * w_bytes
                           + (params.b1p.size + params.b2p.size) * 4
                           + B * a_pad * out_bytes),
    )

    def build(tile, weight_mode, weight_buffers):
        wkw = {} if weight_mode is None else {"pipeline_mode": weight_mode}
        grid = (pl.cdiv(B, tile),)
        return pl.pallas_call(
            bc_mlp_kernel,
            out_shape=jax.ShapeDtypeStruct((B, a_pad), out_dtype),
            grid_spec=pltpu.PrefetchScalarGridSpec(
                num_scalar_prefetch=0,
                grid=grid,
                in_specs=[
                    pl.BlockSpec((tile, in_size), lambda i: (i, 0)),        # x tile
                    pl.BlockSpec((in_size, h_pad), lambda i: (0, 0), **wkw),  # W1
                    pl.BlockSpec((1, h_pad), lambda i: (0, 0), **wkw),        # b1
                    pl.BlockSpec((h_pad, a_pad), lambda i: (0, 0), **wkw),    # W2
                    pl.BlockSpec((1, a_pad), lambda i: (0, 0), **wkw),        # b2
                ],
                out_specs=pl.BlockSpec((tile, a_pad), lambda i: (i, 0)),     # lane-dense
            ),
            compiler_params=pltpu.CompilerParams(
                dimension_semantics=("parallel",),
                vmem_limit_bytes=vmem_limit_for(tile, weight_buffers),
            ),
            cost_estimate=cost,
        )

    args = (x, params.w1p, params.b1p, params.w2p, params.b2p)
    try:
        # Grid-invariant operands do not need double-buffering.
        tile = pick_tile(weight_buffers=1)
        out = build(tile, pl.Buffered(1), weight_buffers=1)(*args)
    except (TypeError, NotImplementedError, pltpu.LoweringException):
        # pipeline_mode rejected -> weights get default 2 buffers; re-derive the
        # tile with double-buffered weights so the real footprint still fits.
        tile = pick_tile(weight_buffers=2)
        out = build(tile, None, weight_buffers=2)(*args)

    return out[:, :num_actions]


def behavior_cloning_apply(x, w1, b1, w2, b2, *, compute_dtype=jnp.bfloat16,
                           tile_b=None, out_dtype=None):
    """One-shot convenience wrapper.  For inference loops, call prepare_params
    once and reuse the BCParams with behavior_cloning_forward."""
    params = prepare_params(w1, b1, w2, b2, compute_dtype=compute_dtype)
    return behavior_cloning_forward(x, params, tile_b=tile_b, out_dtype=out_dtype)


def init_params(key, input_size, hidden_size, num_actions):
    """Deterministic synthetic init (PyTorch-Linear-style uniform fan-in bounds)."""
    k1, k2, k3, k4 = jax.random.split(key, 4)
    bound1 = 1.0 / jnp.sqrt(input_size)
    bound2 = 1.0 / jnp.sqrt(hidden_size)
    # stored already transposed to (in, out)
    w1 = jax.random.uniform(k1, (input_size, hidden_size), jnp.float32, -bound1, bound1)
    b1 = jax.random.uniform(k2, (hidden_size,), jnp.float32, -bound1, bound1)
    w2 = jax.random.uniform(k3, (hidden_size, num_actions), jnp.float32, -bound2, bound2)
    b2 = jax.random.uniform(k4, (num_actions,), jnp.float32, -bound2, bound2)
    return w1, b1, w2, b2


if __name__ == "__main__":
    key = jax.random.PRNGKey(0)
    batch, input_size, hidden_size, num_actions = 8, 16, 32, 4

    kx, kp = jax.random.split(key)
    x = jax.random.normal(kx, (batch, input_size), jnp.float32)
    w1, b1, w2, b2 = init_params(kp, input_size, hidden_size, num_actions)

    # Default path: bf16 MXU streaming, f32 accumulation / bias / ReLU.
    params_bf16 = prepare_params(w1, b1, w2, b2, compute_dtype=jnp.bfloat16)
    out_bf16 = jax.block_until_ready(behavior_cloning_forward(x, params_bf16))
    cd = jnp.bfloat16
    h_ref = jnp.maximum(
        jnp.dot(x.astype(cd), w1.astype(cd), preferred_element_type=jnp.float32) + b1, 0.0)
    ref_bf16 = jnp.dot(h_ref.astype(cd), w2.astype(cd),
                       preferred_element_type=jnp.float32) + b2
    assert out_bf16.shape == (batch, num_actions)
    assert jnp.allclose(out_bf16, ref_bf16, atol=2e-2, rtol=2e-2), \
        float(jnp.max(jnp.abs(out_bf16 - ref_bf16)))

    # f32 compute path vs the PyTorch-equivalent f32 reference.
    params_f32 = prepare_params(w1, b1, w2, b2, compute_dtype=jnp.float32)
    out_f32 = jax.block_until_ready(behavior_cloning_forward(x, params_f32))
    ref_f32 = jnp.maximum(
        jnp.dot(x, w1, precision=jax.lax.Precision.HIGHEST) + b1, 0.0)
    ref_f32 = jnp.dot(ref_f32, w2, precision=jax.lax.Precision.HIGHEST) + b2
    assert jnp.allclose(out_f32, ref_f32, atol=2e-2, rtol=2e-2), \
        float(jnp.max(jnp.abs(out_f32 - ref_f32)))

    print("KERNEL_OK")
</pallas_src>

<mosaic_0001>
module attributes {stable_mosaic.version = 11 : i64} {
  func.func @bc_mlp_kernel(%arg0: i32, %arg1: memref<8x16xf32, #tpu.memory_space<vmem>>, %arg2: memref<16x128xbf16, #tpu.memory_space<vmem>>, %arg3: memref<1x128xf32, #tpu.memory_space<vmem>>, %arg4: memref<128x128xbf16, #tpu.memory_space<vmem>>, %arg5: memref<1x128xf32, #tpu.memory_space<vmem>>, %arg6: memref<8x128xf32, #tpu.memory_space<vmem>>) attributes {dimension_semantics = [#tpu.dimension_semantics<parallel>], iteration_bounds = array<i64: 1>, scalar_prefetch = 0 : i64, scratch_operands = 0 : i64, tpu.core_type = #tpu.core_type<tc>, window_params = [{transform_indices = @transform_0, window_bounds = array<i64: 8, 16>}, {pipeline_mode = #tpu.pipeline_mode<synchronous>, transform_indices = @transform_1, window_bounds = array<i64: 16, 128>}, {pipeline_mode = #tpu.pipeline_mode<synchronous>, transform_indices = @transform_2, window_bounds = array<i64: 1, 128>}, {pipeline_mode = #tpu.pipeline_mode<synchronous>, transform_indices = @transform_3, window_bounds = array<i64: 128, 128>}, {pipeline_mode = #tpu.pipeline_mode<synchronous>, transform_indices = @transform_4, window_bounds = array<i64: 1, 128>}, {transform_indices = @transform_5, window_bounds = array<i64: 8, 128>}]} {
    %c0 = arith.constant 0 : index
    %c0_0 = arith.constant 0 : index
    %0 = vector.load %arg1[%c0, %c0_0] : memref<8x16xf32, #tpu.memory_space<vmem>>, vector<8x16xf32>
    %1 = arith.truncf %0 : vector<8x16xf32> to vector<8x16xbf16>
    %c0_1 = arith.constant 0 : index
    %c0_2 = arith.constant 0 : index
    %2 = vector.load %arg2[%c0_1, %c0_2] : memref<16x128xbf16, #tpu.memory_space<vmem>>, vector<16x128xbf16>
    %cst = arith.constant dense<0.000000e+00> : vector<8x128xf32>
    %3 = tpu.matmul %1, %2, %cst {dimension_numbers = #tpu.dot_dimension_numbers<[1], [0], [0], [1], [0, 0, 1, 1], [], []>} : vector<8x16xbf16>, vector<16x128xbf16>, vector<8x128xf32> -> vector<8x128xf32>
    %c0_3 = arith.constant 0 : index
    %c0_4 = arith.constant 0 : index
    %4 = vector.load %arg3[%c0_3, %c0_4] : memref<1x128xf32, #tpu.memory_space<vmem>>, vector<1x128xf32>
    %5 = vector.broadcast %4 : vector<1x128xf32> to vector<8x128xf32>
    %6 = arith.addf %3, %5 : vector<8x128xf32>
    %cst_5 = arith.constant 0.000000e+00 : f32
    %7 = vector.broadcast %cst_5 : f32 to vector<8x128xf32>
    %8 = arith.maximumf %6, %7 : vector<8x128xf32>
    %9 = arith.truncf %8 : vector<8x128xf32> to vector<8x128xbf16>
    %c0_6 = arith.constant 0 : index
    %c0_7 = arith.constant 0 : index
    %10 = vector.load %arg4[%c0_6, %c0_7] : memref<128x128xbf16, #tpu.memory_space<vmem>>, vector<128x128xbf16>
    %cst_8 = arith.constant dense<0.000000e+00> : vector<8x128xf32>
    %11 = tpu.matmul %9, %10, %cst_8 {dimension_numbers = #tpu.dot_dimension_numbers<[1], [0], [0], [1], [0, 0, 1, 1], [], []>} : vector<8x128xbf16>, vector<128x128xbf16>, vector<8x128xf32> -> vector<8x128xf32>
    %c0_9 = arith.constant 0 : index
    %c0_10 = arith.constant 0 : index
    %12 = vector.load %arg5[%c0_9, %c0_10] : memref<1x128xf32, #tpu.memory_space<vmem>>, vector<1x128xf32>
    %13 = vector.broadcast %12 : vector<1x128xf32> to vector<8x128xf32>
    %14 = arith.addf %11, %13 : vector<8x128xf32>
    %c0_11 = arith.constant 0 : index
    %c0_12 = arith.constant 0 : index
    %15 = vector.load %arg6[%c0_11, %c0_12] : memref<8x128xf32, #tpu.memory_space<vmem>>, vector<8x128xf32>
    tpu.vector_store %arg6[%c0_11, %c0_12], %14 {strides = array<i32>} : memref<8x128xf32, #tpu.memory_space<vmem>>, vector<8x128xf32>,
    return
  }
  func.func @transform_0(%arg0: i32) -> (i32, i32) {
    %c0_i32 = arith.constant 0 : i32
    %c0_i32_0 = arith.constant 0 : i32
    return %arg0, %c0_i32 : i32, i32
  }
  func.func @transform_1(%arg0: i32) -> (i32, i32) {
    %c0_i32 = arith.constant 0 : i32
    %c0_i32_0 = arith.constant 0 : i32
    %c0_i32_1 = arith.constant 0 : i32
    return %c0_i32, %c0_i32_0 : i32, i32
  }
  func.func @transform_2(%arg0: i32) -> (i32, i32) {
    %c0_i32 = arith.constant 0 : i32
    %c0_i32_0 = arith.constant 0 : i32
    %c0_i32_1 = arith.constant 0 : i32
    return %c0_i32, %c0_i32_0 : i32, i32
  }
  func.func @transform_3(%arg0: i32) -> (i32, i32) {
    %c0_i32 = arith.constant 0 : i32
    %c0_i32_0 = arith.constant 0 : i32
    %c0_i32_1 = arith.constant 0 : i32
    return %c0_i32, %c0_i32_0 : i32, i32
  }
  func.func @transform_4(%arg0: i32) -> (i32, i32) {
    %c0_i32 = arith.constant 0 : i32
    %c0_i32_0 = arith.constant 0 : i32
    %c0_i32_1 = arith.constant 0 : i32
    return %c0_i32, %c0_i32_0 : i32, i32
  }
  func.func @transform_5(%arg0: i32) -> (i32, i32) {
    %c0_i32 = arith.constant 0 : i32
    %c0_i32_0 = arith.constant 0 : i32
    return %arg0, %c0_i32 : i32, i32
  }
}

</mosaic_0001>

<bundles_post_ra>
// kernel: tpu_custom_call.1
= control target key start
LH: loop header
LB: loop body
LE: loop exit
PB: predicated region body
PF: predicated region fallthrough
CT: control target
= control target key end

     0   :  { %10 = vsyncpa [#allocation3], 0  ;;  %s460_s0 = inlined_call_operand.hbm [shape: f32[8,16], index: 0, kind: input, shape index: {}]   ;;  %s461_s1 = inlined_call_operand.hbm [shape: bf16[16,128], index: 1, kind: input, shape index: {}]   ;;  %s462_s2 = inlined_call_operand.vmem [shape: f32[1,128], index: 2, kind: input, shape index: {}]   ;;  %s463_s3 = inlined_call_operand.hbm [shape: bf16[128,128], index: 3, kind: input, shape index: {}]   ;;  %s464_s4 = inlined_call_operand.vmem [shape: f32[1,128], index: 4, kind: input, shape index: {}]   ;;  %s465_s5 = inlined_call_operand.hbm [shape: f32[8,128], index: 5, kind: output, shape index: {}]  }
   0x1   :  { %11 = vsyncpa [#allocation6], 0 }
   0x2   :  { %12 = vsyncpa [#allocation4], 0  ;;  %s404_s18 = smov [#allocation5]  }
   0x3   :  { %s28_s19 = sshll.u32 %s404_s18, 4  ;;  %s29_s19 = int_to_ptr.vmem [resolvable:$true] %s28_s19 }
   0x4   :  { %s326_s20 = scalar_lea.vmem %s29_s19, 128  ;;  %p331_p1 = scmp.lt.s32.totalorder %s29_s19, %s29_s19 }
   0x5   :  { %p327_p0 = scmp.ne.s32.totalorder %s29_s19, %s326_s20  ;;  %p332_p2 = scmp.lt.s32.totalorder %s326_s20, %s326_s20 }
   0x7   :  { %p333_p3 = por %p332_p2, %p331_p1 }
   0x9   :  { %p334_p4 = pnand %p333_p3, %p327_p0 }
   0xb   :  { %337 = shalt.err (!%p334_p4)
}
   0xc   :  { %s405_s21 = smov 64   ;;  %s406_s22 = smov 4  }
   0xd   :  { %34 = dma.hbm_to_vmem [thread:$0]  %s461_s1, 128, %s29_s19, [#allocation6], %s405_s21, %s405_s21, %s406_s22  }
   0xe   :  { %s407_s25 = smov [#allocation2]   ;;  %s408_s27 = smov [#allocation7]  }
   0xf   :  { %s19_s26 = sshll.u32 %s407_s25, 4  ;;  %s42_s28 = sshll.u32 %s408_s27, 4  ;;  %s20_s26 = int_to_ptr.vmem [resolvable:$true] %s19_s26  ;;  %s43_s28 = int_to_ptr.vmem [resolvable:$true] %s42_s28 }
  0x10   :  { %s346_s29 = scalar_lea.vmem %s20_s26, 128  ;;  %p351_p6 = scmp.lt.s32.totalorder %s20_s26, %s20_s26 }
  0x11   :  { %p347_p5 = scmp.ne.s32.totalorder %s20_s26, %s346_s29  ;;  %p352_p7 = scmp.lt.s32.totalorder %s346_s29, %s346_s29 }
  0x13   :  { %p353_p8 = por %p352_p7, %p351_p6 }
  0x15   :  { %p354_p9 = pnand %p353_p8, %p347_p5 }
  0x17   :  { %357 = shalt.err (!%p354_p9)
}
  0x18   :  { %22 = dma.hbm_to_vmem [thread:$0]  %s460_s0, 128, %s20_s26, [#allocation3]  }
  0x19   :  { %s366_s7 = scalar_lea.vmem %s43_s28, 1024  ;;  %p371_p11 = scmp.lt.s32.totalorder %s43_s28, %s43_s28 }
  0x1a   :  { %p367_p10 = scmp.ne.s32.totalorder %s43_s28, %s366_s7  ;;  %p372_p12 = scmp.lt.s32.totalorder %s366_s7, %s366_s7 }
  0x1c   :  { %p373_p13 = por %p372_p12, %p371_p11 }
  0x1e   :  { %p374_p0 = pnand %p373_p13, %p367_p10 }
  0x20   :  { %377 = shalt.err (!%p374_p0)
}
  0x21   :  { %48 = dma.hbm_to_vmem [thread:$0]  %s463_s3, 1024, %s43_s28, [#allocation6], %s405_s21, %s405_s21, %s406_s22  }
  0x22   :  { %398 = dma.done.wait [#allocation3], 128  }
  0x23   :  { %399 = vsyncadd [#allocation3], 4294967168 }
  0x24   :  { %400 = dma.done.wait [#allocation6], 1152  }
  0x25   :  { %401 = vsyncadd [#allocation6], 4294966144  ;;  %v409_v0 = vmov 0.0   ;;  %vm410_vm0 = vmmov 0   ;;  %v309_v1 = vld [vmem:[#allocation5] sm:$0xff]   ;;  %v61_v2 = vld [vmem:[#allocation2] sm:$0xff] }
  0x26   :  { %275 = vmatprep.subr.bf16.mxu0 %v409_v0  ;;  %277 = vmatprep.mubr.msk.bf16.mxu0 %vm410_vm0, %v409_v0  ;;  %v62_v3 = vpack.c.bf16 %v61_v2, %v61_v2  ;;  %vm78_vm1 = vcmask 130048   ;;  %v310_v4 = vld [vmem:[#allocation7 + $0x38] sm:$0xff]   ;;  %v311_v5 = vld [vmem:[#allocation7 + $0x30] sm:$0xff]   ;;  %v312_v6 = vld [vmem:[#allocation7 + $0x28] sm:$0xff]   ;;  %s411_s11 = smov [#allocation8]  }
  0x27   :  { %281 = vmatprep.subr.bf16.mxu1 %v409_v0  ;;  %297 = vmatprep.mubr.msk.bf16.mxu1 %vm410_vm0, %v409_v0  ;;  %v313_v7 = vld [vmem:[#allocation7 + $0x20] sm:$0xff]   ;;  %v314_v8 = vld [vmem:[#allocation7 + $0x18] sm:$0xff]   ;;  %v315_v9 = vld [vmem:[#allocation7 + $0x10] sm:$0xff]   ;;  %s242_s12 = sshll.u32 %s411_s11, 4  ;;  %s243_s12 = int_to_ptr.vmem [resolvable:$true] %s242_s12 }
  0x28   :  { %276 = vmatpush3.bf16.msra.mxu0 %v309_v1  ;;  %282 = vmatpush3.bf16.msra.mxu1 %v310_v4  ;;  %v316_v10 = vld [vmem:[#allocation7 + $0x8] sm:$0xff]   ;;  %v317_v11 = vld [vmem:[#allocation7] sm:$0xff]   ;;  %v252_v12 = vld [vmem:[%s462_s2] ss:$0 sm:$0xff]  ;;  %s378_s2 = scalar_lea.vmem %s243_s12, 128  ;;  %p383_p2 = scmp.lt.s32.totalorder %s243_s12, %s243_s12 }
  0x29   :  { %283 = vmatprep.subr.bf16.mxu1 %v409_v0  ;;  %v255_v20 = vld [vmem:[%s464_s4] ss:$0 sm:$0xff]  ;;  %p379_p1 = scmp.ne.s32.totalorder %s243_s12, %s378_s2  ;;  %p384_p3 = scmp.lt.s32.totalorder %s378_s2, %s378_s2 }
  0x2b   :  { %278 = vmatmul.mubr.msk.bf16.vlgmr.msra.gmra.mxu0 %vm78_vm1, %v62_v3  ;;  %p385_p4 = por %p384_p3, %p383_p2 }
  0x2c   :  { %284 = vmatpush3.bf16.msra.mxu1 %v311_v5 }
  0x2d   :  { %285 = vmatprep.subr.bf16.mxu1 %v409_v0  ;;  %p386_p5 = pnand %p385_p4, %p379_p1 }
  0x30   :  { %286 = vmatpush3.bf16.msra.mxu1 %v312_v6 }
  0x31   :  { %287 = vmatprep.subr.bf16.mxu1 %v409_v0 }
  0x34   :  { %288 = vmatpush3.bf16.msra.mxu1 %v313_v7 }
  0x35   :  { %289 = vmatprep.subr.bf16.mxu1 %v409_v0 }
  0x38   :  { %290 = vmatpush3.bf16.msra.mxu1 %v314_v8 }
  0x39   :  { %291 = vmatprep.subr.bf16.mxu1 %v409_v0 }
  0x3c   :  { %292 = vmatpush3.bf16.msra.mxu1 %v315_v9 }
  0x3d   :  { %293 = vmatprep.subr.bf16.mxu1 %v409_v0 }
  0x40   :  { %294 = vmatpush3.bf16.msra.mxu1 %v316_v10 }
  0x41   :  { %295 = vmatprep.subr.bf16.mxu1 %v409_v0 }
  0x44   :  { %296 = vmatpush3.bf16.msra.mxu1 %v317_v11 }
  0xeb   :  { %v116_v13 = vpop.f32.mrf.mxu0 }
  0xec   :  { %v117_v14 = vadd.f32 %v252_v12, %v116_v13 }
  0xed   :  { %v279_v15 = vpop.f32.mrf.mxu0 }
  0xee   :  { %v122_v16 = vmax.f32 %v117_v14, 0.0 }
  0xef   :  { %v119_v17 = vpop.f32.mrf.mxu0 }
  0xf0   :  { %v123_v18 = vpack.c.bf16 %v122_v16, %v122_v16 }
  0xf1   :  { %v280_v19 = vpop.f32.mrf.mxu0 }
  0xf2   :  { %298 = vmatmul.mubr.bf16.vlgmr.msra.gmra.mxu1 %v123_v18 }
 0x1b2   :  { %v229_v21 = vpop.f32.mrf.mxu1 }
 0x1b3   :  { %v230_v22 = vadd.f32 %v255_v20, %v229_v21 }
 0x1b4   :  { %v299_v23 = vpop.f32.mrf.mxu1 }
 0x1b5   :  { %235 = vst [vmem:[#allocation8] sm:$0xff] %v230_v22 }
 0x1b6   :  { %v232_v24 = vpop.f32.mrf.mxu1 }
 0x1b7   :  { %389 = shalt.err (!%p386_p5)
}
 0x1b8   :  { %245 = dma.vmem_to_hbm [thread:$0]  %s243_s12, 128, %s465_s5, [#allocation4]   ;;  %v300_v25 = vpop.f32.mrf.mxu1 }
 0x1b9   :  { %402 = dma.done.wait [#allocation4], 128  }
 0x1ba   :  { %403 = vsyncadd [#allocation4], 4294967168 }
 0x1bb   :  { %249 = vsyncpa [#allocation3], 1 }
 0x1bc   :  { %250 = vsyncpa [#allocation6], 1 }
 0x1bd   :  { %251 = vsyncpa [#allocation4], 1 }

</bundles_post_ra>
